<compile_context>
chip_gen: v7x
topology: tpu7x:2x2x1
jax: 0.10.0
libtpu: 0.0.40
codegen_flags: <defaults>
</compile_context>

<pallas_src>
import functools
import math

import jax
import jax.numpy as jnp
from jax import lax
from jax.experimental import pallas as pl
from jax.experimental.pallas import tpu as pltpu


def _sdpa_kernel(*refs, scale, has_mask, compute_dtype, precision):
    # Batch dim is squeezed by the BlockSpecs; refs are 2-D:
    #   q_ref:    (q_tile, d_model)
    #   k_ref:    (k_len,  d_model)
    #   v_ref:    (k_len,  d_model)
    #   mask_ref: (q_tile, k_len) int32      (only if has_mask)
    #   ctx_ref:  (q_tile, d_model)
    #   attn_ref: (q_tile, k_len)
    if has_mask:
        q_ref, k_ref, v_ref, mask_ref, ctx_ref, attn_ref = refs
    else:
        q_ref, k_ref, v_ref, ctx_ref, attn_ref = refs
        mask_ref = None

    q = q_ref[...]
    k = k_ref[...]
    v = v_ref[...]
    if compute_dtype is not None:
        q = q.astype(compute_dtype)
        k = k.astype(compute_dtype)
        v = v.astype(compute_dtype)

    # Fold 1/sqrt(d) into Q (touches q_tile*d elements, not q_tile*k_len).
    q = q * jnp.asarray(scale, q.dtype)

    # scores = Q K^T — contract the last dims directly so no explicit
    # transpose of K is materialized; accumulate in f32 on the MXU.
    score = lax.dot_general(
        q, k,
        dimension_numbers=(((1,), (1,)), ((), ())),
        preferred_element_type=jnp.float32,
        precision=precision,
    )

    if mask_ref is not None:
        # torch: score.masked_fill_(mask, -inf)  (mask nonzero -> -inf)
        score = jnp.where(mask_ref[...] != 0, -jnp.inf, score)

    # Numerically-stable softmax along the key axis (all f32 math).
    m = jnp.max(score, axis=-1, keepdims=True)
    e = jnp.exp(score - m)
    denom = jnp.sum(e, axis=-1, keepdims=True)
    # Exact reciprocal: denom is only (q_tile, 1), and the result is part of
    # the returned attention matrix, so rows must sum to 1.
    attn = e * pl.reciprocal(denom)

    attn_ref[...] = attn.astype(attn_ref.dtype)

    # context = attn @ V   (f32 accumulation)
    ctx = lax.dot_general(
        attn.astype(v.dtype), v,
        dimension_numbers=(((1,), (0,)), ((), ())),
        preferred_element_type=jnp.float32,
        precision=precision,
    )
    ctx_ref[...] = ctx.astype(ctx_ref.dtype)


def _round_down(x, m):
    return (x // m) * m


def _vmem_budget_bytes():
    """Per-generation VMEM budget with headroom for compiler scratch."""
    try:
        info = pltpu.get_tpu_info()
        cap = getattr(info, "vmem_capacity_bytes", None)
        if cap:
            return int(cap) * 3 // 4           # 96 MiB on v5e/v6e, 48 MiB on v7x
    except Exception:
        pass
    return 48 * 1024 * 1024                    # conservative: fits v7x (64 MiB)


def _select_q_tile(batch, q_len, k_len, d_model, in_itemsize, attn_itemsize,
                   vmem_budget):
    """Largest q tile (multiple of 8, <=512) whose per-step working set fits
    the VMEM budget; keeps the parallel grid at >=2 steps for batch==1."""
    # Resident cost independent of qt: K and V tiles, double-buffered.
    fixed = 2 * 2 * k_len * d_model * in_itemsize
    # Per-q-row cost: Q + ctx tiles (double-buffered), attn tile
    # (double-buffered), plus ~3 f32 (qt, k_len) temporaries (score / exp /
    # normalized attn) inside the kernel body.
    per_row = (2 * d_model * in_itemsize            # Q in
               + 2 * d_model * in_itemsize          # ctx out
               + 2 * k_len * attn_itemsize          # attn out
               + 3 * k_len * 4)                     # f32 temporaries
    avail = vmem_budget - fixed
    qt = avail // per_row if (per_row > 0 and avail > 0) else 8
    qt = int(max(min(qt, 512, q_len), 8))
    # v7x megacore: keep >=2 "parallel" grid steps for single-batch calls.
    if batch == 1 and qt >= q_len and q_len > 8:
        half = -(-q_len // 2)                       # ceil(q_len / 2)
        qt = min(-(-half // 8) * 8, q_len)          # round up to multiple of 8
    if qt >= q_len:
        return q_len                                # full-extent block
    return max(_round_down(qt, 8), 8)


def scaled_dot_product_attention(query, key, value, dim, mask=None, *,
                                 attn_dtype=None, compute_dtype=None,
                                 precision=None, q_tile=None):
    """query: (B, q_len, d), key/value: (B, k_len, d).

    attn_dtype:    dtype of the returned attention matrix (default: input
                   dtype for strict parity; pass jnp.bfloat16 to halve the
                   dominant O(B*S^2) writeback).
    compute_dtype: optional bf16 input cast for the two matmuls (v6e/v7x MXU);
                   softmax math and accumulation stay f32.
    precision:     lax.Precision for the matmuls (HIGHEST = strict f32 parity
                   with torch.bmm; None = fast default MXU path).
    """
    B, q_len, d_model = query.shape
    _, k_len, _ = key.shape
    scale = 1.0 / math.sqrt(float(dim))

    attn_dtype = query.dtype if attn_dtype is None else jnp.dtype(attn_dtype)
    in_itemsize = jnp.dtype(query.dtype).itemsize
    attn_itemsize = jnp.dtype(attn_dtype).itemsize

    vmem_budget = _vmem_budget_bytes()
    if q_tile is None:
        qt = _select_q_tile(B, q_len, k_len, d_model, in_itemsize,
                            attn_itemsize, vmem_budget)
    else:
        qt = min(int(q_tile), q_len)
        if qt < q_len:
            qt = max(_round_down(qt, 8), 8)
    num_q = pl.cdiv(q_len, qt)

    kernel = functools.partial(
        _sdpa_kernel,
        scale=scale,
        has_mask=mask is not None,
        compute_dtype=None if compute_dtype is None else jnp.dtype(compute_dtype),
        precision=precision,
    )

    in_specs = [
        # None -> batch dim squeezed; kernel sees 2-D tiles.
        pl.BlockSpec((None, qt, d_model), lambda b, qi: (b, qi, 0)),
        pl.BlockSpec((None, k_len, d_model), lambda b, qi: (b, 0, 0)),
        pl.BlockSpec((None, k_len, d_model), lambda b, qi: (b, 0, 0)),
    ]
    args = (query, key, value)
    bytes_mask = 0
    if mask is not None:
        # torch does mask.view(score.size()): reshape to (B, q_len, k_len).
        mask_i32 = jnp.asarray(mask).reshape(B, q_len, k_len).astype(jnp.int32)
        in_specs.append(pl.BlockSpec((None, qt, k_len), lambda b, qi: (b, qi, 0)))
        args = args + (mask_i32,)
        bytes_mask = 4 * B * q_len * k_len

    cost = pl.CostEstimate(
        flops=4 * B * q_len * k_len * d_model,            # QK^T + attn@V
        transcendentals=B * q_len * k_len,                # exp
        bytes_accessed=(
            in_itemsize * B * (q_len * d_model            # Q in
                               + 2 * k_len * d_model      # K, V in
                               + q_len * d_model)         # context out
            + attn_itemsize * B * q_len * k_len           # attn out
            + bytes_mask),
    )

    ctx, attn = pl.pallas_call(
        kernel,
        out_shape=(
            jax.ShapeDtypeStruct((B, q_len, d_model), query.dtype),  # context
            jax.ShapeDtypeStruct((B, q_len, k_len), attn_dtype),     # attn
        ),
        grid_spec=pltpu.PrefetchScalarGridSpec(
            num_scalar_prefetch=0,
            grid=(B, num_q),
            in_specs=in_specs,
            out_specs=(
                pl.BlockSpec((None, qt, d_model), lambda b, qi: (b, qi, 0)),
                pl.BlockSpec((None, qt, k_len), lambda b, qi: (b, qi, 0)),
            ),
        ),
        compiler_params=pltpu.CompilerParams(
            dimension_semantics=("parallel", "parallel"),
            vmem_limit_bytes=int(vmem_budget),
        ),
        cost_estimate=cost,
    )(*args)
    return ctx, attn


def _reference(query, key, value, dim, mask=None, precision=None):
    score = jnp.einsum("bqd,bkd->bqk", query, key,
                       precision=precision) / jnp.sqrt(jnp.float32(dim))
    if mask is not None:
        score = jnp.where(jnp.asarray(mask).reshape(score.shape), -jnp.inf, score)
    attn = jax.nn.softmax(score, axis=-1)
    ctx = jnp.einsum("bqk,bkd->bqd", attn, value, precision=precision)
    return ctx, attn


if __name__ == "__main__":
    # Small shapes consistent with the module's forward: (batch, seq, d_model)
    B, Q_LEN, K_LEN, D_MODEL = 2, 8, 8, 32

    key0 = jax.random.PRNGKey(0)
    kq, kk, kv = jax.random.split(key0, 3)
    query = jax.random.normal(kq, (B, Q_LEN, D_MODEL), dtype=jnp.float32)
    key_ = jax.random.normal(kk, (B, K_LEN, D_MODEL), dtype=jnp.float32)
    value = jax.random.normal(kv, (B, K_LEN, D_MODEL), dtype=jnp.float32)

    # 1) strict-parity path: exact f32 matmuls, f32 attn, exact softmax recip.
    ctx, attn = scaled_dot_product_attention(
        query, key_, value, dim=D_MODEL, precision=lax.Precision.HIGHEST)
    jax.block_until_ready((ctx, attn))
    ctx_ref, attn_ref = _reference(query, key_, value, D_MODEL,
                                   precision=lax.Precision.HIGHEST)
    assert jnp.allclose(ctx, ctx_ref, atol=1e-4, rtol=1e-4), "context mismatch"
    assert jnp.allclose(attn, attn_ref, atol=1e-4, rtol=1e-4), "attn mismatch"
    assert jnp.allclose(jnp.sum(attn, axis=-1), 1.0, atol=1e-5), "attn rows != 1"

    # 2) masked path (masked_fill_ with -inf before softmax).
    mask = jnp.zeros((B, Q_LEN, K_LEN), dtype=jnp.bool_).at[:, :, -2:].set(True)
    ctx_m, attn_m = scaled_dot_product_attention(
        query, key_, value, dim=D_MODEL, mask=mask,
        precision=lax.Precision.HIGHEST)
    jax.block_until_ready((ctx_m, attn_m))
    ctx_mr, attn_mr = _reference(query, key_, value, D_MODEL, mask=mask,
                                 precision=lax.Precision.HIGHEST)
    assert jnp.allclose(ctx_m, ctx_mr, atol=1e-4, rtol=1e-4), "masked ctx mismatch"
    assert jnp.allclose(attn_m, attn_mr, atol=1e-4, rtol=1e-4), "masked attn mismatch"
    assert jnp.allclose(attn_m[:, :, -2:], 0.0), "masked attn entries not zero"

    # 3) fast path: default MXU precision + bf16 attn writeback (perf config).
    ctx_f, attn_f = scaled_dot_product_attention(
        query, key_, value, dim=D_MODEL, attn_dtype=jnp.bfloat16)
    jax.block_until_ready((ctx_f, attn_f))
    assert attn_f.dtype == jnp.bfloat16
    assert jnp.allclose(ctx_f, ctx_ref, atol=2e-2, rtol=2e-2), "fast ctx mismatch"
    assert jnp.allclose(attn_f.astype(jnp.float32), attn_ref,
                        atol=2e-2, rtol=2e-2), "fast attn mismatch"

    print("KERNEL_OK")
</pallas_src>

<mosaic_0001>
module attributes {stable_mosaic.version = 11 : i64} {
  func.func @_sdpa_kernel(%arg0: i32, %arg1: i32, %arg2: memref<1x8x32xf32, #tpu.memory_space<vmem>>, %arg3: memref<1x8x32xf32, #tpu.memory_space<vmem>>, %arg4: memref<1x8x32xf32, #tpu.memory_space<vmem>>, %arg5: memref<1x8x32xf32, #tpu.memory_space<vmem>>, %arg6: memref<1x8x8xf32, #tpu.memory_space<vmem>>) attributes {dimension_semantics = [#tpu.dimension_semantics<parallel>, #tpu.dimension_semantics<parallel>], iteration_bounds = array<i64: 2, 1>, scalar_prefetch = 0 : i64, scratch_operands = 0 : i64, tpu.core_type = #tpu.core_type<tc>, window_params = [{transform_indices = @transform_0, window_bounds = array<i64: 1, 8, 32>}, {transform_indices = @transform_1, window_bounds = array<i64: 1, 8, 32>}, {transform_indices = @transform_2, window_bounds = array<i64: 1, 8, 32>}, {transform_indices = @transform_3, window_bounds = array<i64: 1, 8, 32>}, {transform_indices = @transform_4, window_bounds = array<i64: 1, 8, 8>}]} {
    %c0 = arith.constant 0 : index
    %c0_0 = arith.constant 0 : index
    %c0_1 = arith.constant 0 : index
    %0 = vector.load %arg2[%c0, %c0_0, %c0_1] : memref<1x8x32xf32, #tpu.memory_space<vmem>>, vector<1x8x32xf32>
    %1 = vector.shape_cast %0 : vector<1x8x32xf32> to vector<8x32xf32>
    %c0_2 = arith.constant 0 : index
    %c0_3 = arith.constant 0 : index
    %c0_4 = arith.constant 0 : index
    %2 = vector.load %arg3[%c0_2, %c0_3, %c0_4] : memref<1x8x32xf32, #tpu.memory_space<vmem>>, vector<1x8x32xf32>
    %3 = vector.shape_cast %2 : vector<1x8x32xf32> to vector<8x32xf32>
    %c0_5 = arith.constant 0 : index
    %c0_6 = arith.constant 0 : index
    %c0_7 = arith.constant 0 : index
    %4 = vector.load %arg4[%c0_5, %c0_6, %c0_7] : memref<1x8x32xf32, #tpu.memory_space<vmem>>, vector<1x8x32xf32>
    %5 = vector.shape_cast %4 : vector<1x8x32xf32> to vector<8x32xf32>
    %cst = arith.constant 0.176776692 : f32
    %6 = vector.broadcast %cst : f32 to vector<8x32xf32>
    %7 = arith.mulf %1, %6 : vector<8x32xf32>
    %cst_8 = arith.constant dense<0.000000e+00> : vector<8x8xf32>
    %8 = tpu.matmul %7, %3, %cst_8 {dimension_numbers = #tpu.dot_dimension_numbers<[1], [1], [0], [0], [0, 0, 1, 0], [], []>, precision = #tpu.contract_precision<fp32>} : vector<8x32xf32>, vector<8x32xf32>, vector<8x8xf32> -> vector<8x8xf32>
    %cst_9 = arith.constant dense<0xFF800000> : vector<8xf32>
    %9 = vector.multi_reduction <maximumf>, %8, %cst_9 [1] : vector<8x8xf32> to vector<8xf32>
    %10 = vector.shape_cast %9 : vector<8xf32> to vector<8x1xf32>
    %11 = vector.broadcast %10 : vector<8x1xf32> to vector<8x8xf32>
    %12 = arith.subf %8, %11 : vector<8x8xf32>
    %13 = math.exp %12 : vector<8x8xf32>
    %cst_10 = arith.constant dense<0.000000e+00> : vector<8xf32>
    %14 = vector.multi_reduction <add>, %13, %cst_10 [1] : vector<8x8xf32> to vector<8xf32>
    %15 = vector.shape_cast %14 : vector<8xf32> to vector<8x1xf32>
    %16 = tpu.reciprocal %15 : vector<8x1xf32> -> vector<8x1xf32>
    %17 = vector.broadcast %16 : vector<8x1xf32> to vector<8x8xf32>
    %18 = arith.mulf %13, %17 : vector<8x8xf32>
    %c0_11 = arith.constant 0 : index
    %c0_12 = arith.constant 0 : index
    %c0_13 = arith.constant 0 : index
    %19 = vector.load %arg6[%c0_11, %c0_12, %c0_13] : memref<1x8x8xf32, #tpu.memory_space<vmem>>, vector<1x8x8xf32>
    %20 = vector.shape_cast %19 : vector<1x8x8xf32> to vector<8x8xf32>
    %21 = vector.shape_cast %18 : vector<8x8xf32> to vector<1x8x8xf32>
    tpu.vector_store %arg6[%c0_11, %c0_12, %c0_13], %21 {strides = array<i32>} : memref<1x8x8xf32, #tpu.memory_space<vmem>>, vector<1x8x8xf32>,
    %cst_14 = arith.constant dense<0.000000e+00> : vector<8x32xf32>
    %22 = tpu.matmul %18, %5, %cst_14 {dimension_numbers = #tpu.dot_dimension_numbers<[1], [0], [0], [1], [0, 0, 1, 1], [], []>, precision = #tpu.contract_precision<fp32>} : vector<8x8xf32>, vector<8x32xf32>, vector<8x32xf32> -> vector<8x32xf32>
    %c0_15 = arith.constant 0 : index
    %c0_16 = arith.constant 0 : index
    %c0_17 = arith.constant 0 : index
    %23 = vector.load %arg5[%c0_15, %c0_16, %c0_17] : memref<1x8x32xf32, #tpu.memory_space<vmem>>, vector<1x8x32xf32>
    %24 = vector.shape_cast %23 : vector<1x8x32xf32> to vector<8x32xf32>
    %25 = vector.shape_cast %22 : vector<8x32xf32> to vector<1x8x32xf32>
    tpu.vector_store %arg5[%c0_15, %c0_16, %c0_17], %25 {strides = array<i32>} : memref<1x8x32xf32, #tpu.memory_space<vmem>>, vector<1x8x32xf32>,
    return
  }
  func.func @transform_0(%arg0: i32, %arg1: i32) -> (i32, i32, i32) {
    %c0_i32 = arith.constant 0 : i32
    %c0_i32_0 = arith.constant 0 : i32
    return %arg0, %arg1, %c0_i32 : i32, i32, i32
  }
  func.func @transform_1(%arg0: i32, %arg1: i32) -> (i32, i32, i32) {
    %c0_i32 = arith.constant 0 : i32
    %c0_i32_0 = arith.constant 0 : i32
    %c0_i32_1 = arith.constant 0 : i32
    return %arg0, %c0_i32, %c0_i32_0 : i32, i32, i32
  }
  func.func @transform_2(%arg0: i32, %arg1: i32) -> (i32, i32, i32) {
    %c0_i32 = arith.constant 0 : i32
    %c0_i32_0 = arith.constant 0 : i32
    %c0_i32_1 = arith.constant 0 : i32
    return %arg0, %c0_i32, %c0_i32_0 : i32, i32, i32
  }
  func.func @transform_3(%arg0: i32, %arg1: i32) -> (i32, i32, i32) {
    %c0_i32 = arith.constant 0 : i32
    %c0_i32_0 = arith.constant 0 : i32
    return %arg0, %arg1, %c0_i32 : i32, i32, i32
  }
  func.func @transform_4(%arg0: i32, %arg1: i32) -> (i32, i32, i32) {
    %c0_i32 = arith.constant 0 : i32
    %c0_i32_0 = arith.constant 0 : i32
    return %arg0, %arg1, %c0_i32 : i32, i32, i32
  }
}

</mosaic_0001>

<bundles_post_ra>
// kernel: tpu_custom_call.1
= control target key start
LH: loop header
LB: loop body
LE: loop exit
PB: predicated region body
PF: predicated region fallthrough
CT: control target
= control target key end

     0   :  { %s2214_s0 = inlined_call_operand.hbm [shape: f32[2,8,32], index: 0, kind: input, shape index: {}]   ;;  %s2215_s1 = inlined_call_operand.hbm [shape: f32[2,8,32], index: 1, kind: input, shape index: {}]   ;;  %s2216_s2 = inlined_call_operand.hbm [shape: f32[2,8,32], index: 2, kind: input, shape index: {}]   ;;  %s2217_s3 = inlined_call_operand.hbm [shape: f32[2,8,32], index: 3, kind: output, shape index: {0}]   ;;  %s2218_s4 = inlined_call_operand.hbm [shape: f32[2,8,8], index: 4, kind: output, shape index: {1}]  }
   0x1   :  { %2227 = sst [smem:[#allocation19_spill]] %s2215_s1 }
   0x2   :  { %10 = vsyncpa [#allocation3], 0 }
   0x3   :  { %12 = vsyncpa [#allocation3 + $0x1], 0 }
   0x4   :  { %13 = vsyncpa [#allocation6], 0 }
   0x5   :  { %15 = vsyncpa [#allocation6 + $0x1], 0 }
   0x6   :  { %16 = vsyncpa [#allocation4], 0 }
   0x7   :  { %18 = vsyncpa [#allocation4 + $0x1], 0 }
   0x8   :  { %19 = vsyncpa [#allocation10], 0 }
   0x9   :  { %21 = vsyncpa [#allocation10 + $0x1], 0  ;;  %s1875_s15 = smov 0   ;;  %s1877_s16 = smov 0  }
   0xa   :  { %s1879_s17 = smov 0   ;;  %s1881_s18 = smov 0  }
   0xb   :  { %s1883_s19 = smov 0   ;;  %s1885_s20 = smov 0  }
   0xc LB: > { %2228 = sst [smem:[#allocation15_spill]] %s1837_s19  ;;  %s1906_s21 = sadd.s32 4294967295, %s1841_s20   ;;  %s1841_s20 = sphi %s1885_s20, %s27_s20   ;;  %s1837_s19 = sphi %s1883_s19, %s2252_s19   ;;  %s1833_s18 = sphi %s1881_s18, %s2251_s18   ;;  %s1829_s17 = sphi %s1879_s17, %s2255_s17   ;;  %s1825_s16 = sphi %s1877_s16, %s2254_s16   ;;  %s1821_s15 = sphi %s1875_s15, %s2253_s15  }
   0xd   : > { %2229 = sst [smem:[#allocation16_spill]] %s1841_s20  ;;  %s1425_s22 = sadd.s32 4294967294, %s1841_s20  }
   0xe   : > { %s39_s23 = sadd.s32 1, %s1837_s19  ;;  %s48_s24 = sadd.s32 1, %s1829_s17 }
   0xf   : > { %p41_p0 = scmp.ge.s32.totalorder %s39_s23, 2  ;;  %p55_p1 = scmp.ne.s32.totalorder %s1829_s17, %s1825_s16 }
  0x10   : > { %p56_p2 = scmp.eq.s32.totalorder %s1841_s20, 0  ;;  %p61_p3 = scmp.ne.s32.totalorder %s1825_s16, %s1821_s15 }
  0x11   : > { %s2257_s23 = smov (%p41_p0, %s39_s23), 0  ;;  %p62_p5 = scmp.eq.s32.totalorder %s1906_s21, 0 }
  0x12   : > { %2230 = sst [smem:[#allocation17_spill]] %s2257_s23  ;;  %p1918_p4 = por %p56_p2, %p55_p1 }
  0x13   : > { %s43_s26 = ssub.s32 %s1837_s19, %s2257_s23  ;;  %p139_p6 = scmp.eq.s32.totalorder %s1906_s21, 1 }
  0x14   : > { %p46_p7 = scmp.eq.s32.totalorder %s43_s26, 0  ;;  %p1926_p8 = por %p62_p5, %p61_p3 }
  0x15   : > { %p1930_p9 = por %p139_p6, %p55_p1  ;;  %p145_p10 = scmp.eq.s32.totalorder %s1425_s22, 1 }
  0x16   : > { %s2232_s27 = scalar_select %p1926_p8, 1, 0 }
  0x17   : > { %s2233_s28 = scalar_select %p1930_p9, 1, 0 }
  0x18   : > { %s1935_s29 = scalar_select %p46_p7, %s1829_s17, %s48_s24  }
  0x19   : > { %p1937_p11 = por %p145_p10, %p61_p3  ;;  %p1577_p13 = scmp.lt.s32.totalorder %s1841_s20, 2 }
  0x1a   : > { %2234 = sst [smem:[#allocation18_spill]] %s1935_s29  ;;  %s2219_s5 = sand.u32 1, %s1829_s17  }
  0x1b   : > { %s2235_s30 = scalar_select %p1937_p11, 1, 0 }
  0x1c   : > { %s1946_s6 = sshll.u32 %s2219_s5, 3  ;;  %s1949_s7 = sshll.u32 %s1837_s19, 7 }
  0x1d   : > { %p1953_p0 = pnand %p1577_p13, %p1918_p4  ;;  %s212_s9 = sand.u32 1, %s1841_s20  }
  0x1e   : > { %s2237_s1 = sld [smem:[#allocation19_spill]]  ;;  %s216_s13 = scalar_lea.vmem [#allocation5], %s1946_s6 }
  0x1f   : > { %s2236_s8 = scalar_select %p1953_p0, 1, 0 }
  0x20   : > { %s223_s14 = sshll.u32 %s216_s13, 4  ;;  %s1969_s22 = scalar_lea.sflag [#allocation6], %s212_s9  ;;  %s1966_s14 = int_to_ptr.vmem [resolvable:$true] %s223_s14 }
  0x21   : > { %p1975_p4 = pneg %p1953_p0 }
  0x24   : > { %s1962_s12 = scalar_lea.hbm %s2237_s1, %s1949_s7  ;;  %s1638_s11 = scalar_lea.hbm %s2237_s1, 256 }
  0x25   : > { %s1633_s24 = scalar_lea.hbm %s1962_s12, 128  ;;  %p1639_p7 = scmp.lt.u32.totalorder %s1962_s12, %s2237_s1 }
  0x26   : > { %p1634_p3 = scmp.ne.s32.totalorder %s1962_s12, %s1633_s24  ;;  %p1640_p10 = scmp.lt.u32.totalorder %s1638_s11, %s1633_s24 }
  0x27   : > { %p1642_p12 = scmp.lt.u32.totalorder %s1633_s24, %s1962_s12 }
  0x28   : > { %p1636_p5 = pnand %p1975_p4, %p1634_p3  ;;  %p1641_p13 = por %p1640_p10, %p1639_p7 }
  0x2a   : > { %p1637_p6 = pneg %p1636_p5  ;;  %p1643_p1 = por %p1642_p12, %p1641_p13 }
  0x2c   : > { %p1644_p2 = pnand %p1643_p1, %p1637_p6 }
  0x2e   : > { %1647 = shalt.err (!%p1644_p2)
}
  0x2f   : > { %s1648_s9 = scalar_lea.vmem %s1966_s14, 128  ;;  %s1843_s26 = smov [#allocation5]  }
  0x30   : > { %p1649_p3 = scmp.ne.s32.totalorder %s1966_s14, %s1648_s9  ;;  %s1653_s10 = sshll.u32 %s1843_s26, 4  ;;  %s1654_s10 = int_to_ptr.vmem [resolvable:$false] %s1653_s10 }
  0x31   : > { %s1655_s5 = scalar_lea.vmem %s1654_s10, 256  ;;  %p1656_p9 = scmp.lt.s32.totalorder %s1966_s14, %s1654_s10 }
  0x32   : > { %p1651_p5 = pnand %p1649_p3, %p1975_p4  ;;  %p1657_p8 = scmp.lt.s32.totalorder %s1655_s5, %s1648_s9 }
  0x34   : > { %p1652_p11 = pneg %p1651_p5  ;;  %p1658_p7 = por %p1657_p8, %p1656_p9 }
  0x36   : > { %p1659_p10 = pnand %p1658_p7, %p1652_p11 }
  0x38   : > { %1662 = shalt.err (!%p1659_p10)
}
  0x39   : > { %1566 = dma.hbm_to_vmem [thread:$0]  (!%p1953_p0), %s1962_s12, 128, %s1966_s14, %s1969_s22  }
  0x3a   : > { %p2239_p12 = scmp.lt.s32.totalorder %s1841_s20, 3  ;;  %p2240_p1 = scmp.ge.s32.totalorder %s1841_s20, 1 }
  0x3b   : > { %s2011_s9 = scalar_lea.hbm %s2214_s0, %s1949_s7  ;;  %s197_s26 = scalar_lea.vmem [#allocation2], %s1946_s6 }
  0x3c   : > { %p2003_p2 = pnand %p2240_p1, %p2239_p12  ;;  %s205_s10 = sshll.u32 %s197_s26, 4  ;;  %s2014_s10 = int_to_ptr.vmem [resolvable:$true] %s205_s10 }
  0x3d   : > { %s2020_s5 = scalar_lea.hbm %s2216_s2, %s1949_s7  ;;  %s2242_s1 = sand.u32 1, %s1829_s17  }
  0x3e   : > { %s2241_s24 = scalar_select %p2003_p2, 1, 0 }
  0x3f   : > { %s194_s23 = scalar_lea.sflag [#allocation3], %s2242_s1  ;;  %s1663_s19 = scalar_lea.hbm %s2011_s9, 128 }
  0x40   : > { %p1664_p8 = scmp.ne.s32.totalorder %s2011_s9, %s1663_s19  ;;  %s1668_s29 = scalar_lea.hbm %s2214_s0, 256 }
  0x41   : > { %p1669_p6 = scmp.lt.u32.totalorder %s2011_s9, %s2214_s0  ;;  %p1670_p13 = scmp.lt.u32.totalorder %s1668_s29, %s1663_s19 }
  0x42   : > { %p1666_p9 = pnand %p1664_p8, %p1975_p4  ;;  %p1672_p5 = scmp.lt.u32.totalorder %s1663_s19, %s2011_s9 }
  0x43   : > { %p1671_p3 = por %p1670_p13, %p1669_p6 }
  0x44   : > { %p1667_p11 = pneg %p1666_p9 }
  0x45   : > { %p1673_p7 = por %p1672_p5, %p1671_p3 }
  0x47   : > { %p1674_p10 = pnand %p1673_p7, %p1667_p11 }
  0x49   : > { %1677 = shalt.err (!%p1674_p10)
}
  0x4a   : > { %s1678_s1 = scalar_lea.vmem %s2014_s10, 128  ;;  %s1844_s7 = smov [#allocation2]  }
  0x4b   : > { %p1679_p12 = scmp.ne.s32.totalorder %s2014_s10, %s1678_s1  ;;  %s1683_s12 = sshll.u32 %s1844_s7, 4  ;;  %s1684_s12 = int_to_ptr.vmem [resolvable:$false] %s1683_s12 }
  0x4c   : > { %s1685_s20 = scalar_lea.vmem %s1684_s12, 256  ;;  %p1686_p9 = scmp.lt.s32.totalorder %s2014_s10, %s1684_s12 }
  0x4d   : > { %p1681_p1 = pnand %p1679_p12, %p1975_p4  ;;  %p1687_p2 = scmp.lt.s32.totalorder %s1685_s20, %s1678_s1 }
  0x4f   : > { %p1682_p8 = pneg %p1681_p1  ;;  %p1688_p6 = por %p1687_p2, %p1686_p9 }
  0x51   : > { %p1689_p13 = pnand %p1688_p6, %p1682_p8 }
  0x53   : > { %1692 = shalt.err (!%p1689_p13)
}
  0x54   : > { %1563 = dma.hbm_to_vmem [thread:$0]  (!%p1953_p0), %s2011_s9, 128, %s2014_s10, %s194_s23  }
  0x55   : > { %s234_s19 = scalar_lea.vmem [#allocation7], %s1946_s6  ;;  %s1693_s14 = scalar_lea.hbm %s2020_s5, 128 }
  0x56   : > { %s241_s29 = sshll.u32 %s234_s19, 4  ;;  %p1694_p11 = scmp.ne.s32.totalorder %s2020_s5, %s1693_s14  ;;  %s242_s29 = int_to_ptr.vmem [resolvable:$true] %s241_s29 }
  0x57   : > { %s1698_s26 = scalar_lea.hbm %s2216_s2, 256  ;;  %p1699_p5 = scmp.lt.u32.totalorder %s2020_s5, %s2216_s2 }
  0x58   : > { %p1696_p2 = pnand %p1694_p11, %p1975_p4  ;;  %p1700_p7 = scmp.lt.u32.totalorder %s1698_s26, %s1693_s14 }
  0x59   : > { %p1702_p12 = scmp.lt.u32.totalorder %s1693_s14, %s2020_s5 }
  0x5a   : > { %p1697_p3 = pneg %p1696_p2  ;;  %p1701_p10 = por %p1700_p7, %p1699_p5 }
  0x5c   : > { %p1703_p1 = por %p1702_p12, %p1701_p10 }
  0x5e   : > { %p1704_p8 = pnand %p1703_p1, %p1697_p3 }
  0x60   : > { %1707 = shalt.err (!%p1704_p8)
}
  0x61   : > { %s1708_s23 = scalar_lea.vmem %s242_s29, 128  ;;  %s1845_s6 = smov [#allocation7]  }
  0x62   : > { %p1709_p9 = scmp.ne.s32.totalorder %s242_s29, %s1708_s23  ;;  %s1713_s9 = sshll.u32 %s1845_s6, 4  ;;  %s1714_s9 = int_to_ptr.vmem [resolvable:$false] %s1713_s9 }
  0x63   : > { %s1715_s10 = scalar_lea.vmem %s1714_s9, 256  ;;  %p1716_p11 = scmp.lt.s32.totalorder %s242_s29, %s1714_s9 }
  0x64   : > { %p1711_p6 = pnand %p1709_p9, %p1975_p4  ;;  %p1717_p2 = scmp.lt.s32.totalorder %s1715_s10, %s1708_s23 }
  0x66   : > { %p1712_p13 = pneg %p1711_p6  ;;  %p1718_p0 = por %p1717_p2, %p1716_p11 }
  0x68   : > { %p1719_p5 = pnand %p1718_p0, %p1712_p13 }
  0x6a   : > { %1722 = shalt.err (!%p1719_p5)
}
  0x6b   : > { %p2243_p7 = scmp.ne.s32.totalorder %s2236_s8, 0  ;;  %p2244_p3 = scmp.ne.s32.totalorder %s2241_s24, 0 }
  0x6c   : > { %s2067_s25 = sand.u32 (!%p2244_p3), 1, %s1825_s16   ;;  %p2245_p0 = scmp.ne.s32.totalorder (!%p2244_p3), %s2232_s27, 0 }
  0x6d   : > { %1569 = dma.hbm_to_vmem [thread:$0]  (!%p2243_p7), %s2020_s5, 128, %s242_s29, %s1969_s22  }
  0x6e   : > { %250 = sbr.rel (%p2244_p3) target bundleno = 978 (0x3d2), region = 32  ;;  %s2070_s12 = sshll.u32 (!%p2244_p3), %s2067_s25, 3 }
  0x6f   : > { %s253_s20 = scalar_lea.sflag (!%p2244_p3), [#allocation3], %s2067_s25  ;;  %s256_s19 = scalar_lea.vmem (!%p2244_p3), [#allocation2], %s2070_s12 }
  0x75   : > { %1804 = dma.done.wait (%p2245_p0), %s253_s20, 128  }
  0x76   : > { %1806 = vsyncadd (%p2245_p0), %s253_s20, 4294967168  ;;  %s261_s8 = sand.u32 1, %s1906_s21   ;;  %s265_s24 = scalar_lea.vmem [#allocation5], %s2070_s12 }
  0x77   : > { %s262_s22 = scalar_lea.sflag [#allocation6], %s261_s8 }
  0x78   : > { %1808 = dma.done.wait (%p2245_p0), %s262_s22, 256  }
  0x79   : > { %1810 = vsyncadd (%p2245_p0), %s262_s22, 4294967040  ;;  %v1846_v0 = vmov 0.0   ;;  %vm1847_vm0 = vmmov 0   ;;  %v315_v1 = vld [vmem:[%s265_s24] sm:$0xff]  ;;  %vm318_vm1 = vcmask 261120   ;;  %v314_v2 = vld [vmem:[%s256_s19] sm:$0xff] }
  0x7a   : > { %1470 = vmatprep.subr.mxu0 %v1846_v0  ;;  %1472 = vmatprep.mubr.msk.f32.mxu0 %vm1847_vm0, %v1846_v0  ;;  %v323_v3 = vsel %vm318_vm1, %v315_v1, 0  ;;  %v317_v4 = vmul.f32 0.17677669, %v314_v2  ;;  %vm771_vm2 = vcmask 64512   ;;  %s274_s21 = scalar_lea.vmem [#allocation7], %s2070_s12  ;;  %s313_s27 = scalar_lea.vmem [#allocation9], %s2070_s12 }
  0x7b   : > { %1500 = vmatprep.subr.mxu1 %v1846_v0  ;;  %1502 = vmatprep.mubr.msk.f32.mxu1 %vm1847_vm0, %v1846_v0  ;;  %v326_v5 = vand.u32 4294901760, %v323_v3  ;;  %v316_v24 = vld [vmem:[%s274_s21] sm:$0xff]  ;;  %s1442_s5 = sshll.u32 %s1833_s18, 7  ;;  %s1268_s13 = sshll.u32 %s313_s27, 4  ;;  %s1269_s13 = int_to_ptr.vmem [resolvable:$true] %s1268_s13 }
  0x7c   : > { %v320_v6 = vsel %vm318_vm1, %v317_v4, 0  ;;  %v788_v25 = vand.u32 4294901760, %v316_v24  ;;  %s2136_s11 = scalar_lea.hbm %s2218_s4, %s1442_s5  ;;  %s1240_s26 = scalar_lea.sflag [#allocation10], %s2067_s25 }
  0x7d   : > { %1471 = vmatpush3.xpose.msra.mxu0 %v326_v5  ;;  %v403_v7 = vsub.f32 %v323_v3, %v326_v5  ;;  %v391_v8 = vand.u32 4294901760, %v320_v6  ;;  %s1723_s1 = scalar_lea.vmem %s1269_s13, 128  ;;  %p2246_p10 = scmp.ne.s32.totalorder %s2233_s28, 0 }
  0x7e   : > { %1475 = vmatprep.subr.mxu0 %v1846_v0  ;;  %1501 = vmatpush3.msra.mxu1 %v788_v25  ;;  %v865_v27 = vsub.f32 %v316_v24, %v788_v25  ;;  %p1724_p4 = scmp.ne.s32.totalorder %s1269_s13, %s1723_s1  ;;  %s1848_s7 = smov [#allocation9]  }
  0x7f   : > { %v392_v9 = vsub.f32 %v320_v6, %v391_v8  ;;  %v404_v10 = vand.u32 4294901760, %v403_v7  ;;  %1505 = vmatprep.subr.mxu1 %v1846_v0  ;;  %s1727_s23 = sshll.u32 %s1848_s7, 4  ;;  %s1728_s23 = int_to_ptr.vmem [resolvable:$false] %s1727_s23 }
  0x80   : > { %v866_v31 = vand.u32 4294901760, %v865_v27  ;;  %p1725_p12 = pnand %p1724_p4, %p2246_p10  ;;  %s1729_s6 = scalar_lea.vmem %s1728_s23, 256 }
  0x81   : > { %v393_v11 = vand.u32 4294901760, %v392_v9  ;;  %v405_v12 = vsub.f32 %v403_v7, %v404_v10  ;;  %p1730_p8 = scmp.lt.s32.totalorder %s1269_s13, %s1728_s23  ;;  %p1731_p9 = scmp.lt.s32.totalorder %s1729_s6, %s1723_s1 }
  0x82   : > { %v867_v34 = vsub.f32 %v865_v27, %v866_v31  ;;  %p1726_p1 = pneg %p1725_p12 }
  0x83   : > { %v394_v13 = vsub.f32 %v392_v9, %v393_v11  ;;  %v406_v14 = vand.u32 4294901760, %v405_v12  ;;  %p1732_p6 = por %p1731_p9, %p1730_p8 }
  0x84   : > { %v868_v37 = vand.u32 4294901760, %v867_v34 }
  0x85   : > { %v395_v15 = vand.u32 4294901760, %v394_v13  ;;  %p1733_p13 = pnand %p1732_p6, %p1726_p1 }
  0x87   : > { %1473 = vmatmul.mubr.f32.vlgmr.msra.gmra.mrb[0].mxu0 %v395_v15 }
  0x88   : > { %1476 = vmatpush3.xpose.msra.mxu0 %v406_v14  ;;  %1477 = vmatprep.mubr.msk.f32.mxu0 %vm1847_vm0, %v1846_v0 }
  0x89   : > { %1480 = vmatprep.subr.mxu0 %v1846_v0 }
  0x8f   : > { %1478 = vmatmul.mubr.f32.vlgmr.msra.gmra.mrb[0].mxu0 %v391_v8 }
  0x90   : > { %1481 = vmatpush3.xpose.msra.mxu0 %v403_v7  ;;  %1482 = vmatprep.mubr.msk.f32.mxu0 %vm1847_vm0, %v1846_v0 }
  0x91   : > { %1485 = vmatprep.subr.mxu0 %v1846_v0 }
  0x97   : > { %1483 = vmatmul.mubr.f32.vlgmr.msra.gmra.mrb[0].mxu0 %v392_v9 }
  0x98   : > { %1486 = vmatpush3.xpose.msra.mxu0 %v326_v5  ;;  %1487 = vmatprep.mubr.msk.f32.mxu0 %vm1847_vm0, %v1846_v0 }
  0x99   : > { %1490 = vmatprep.subr.mxu0 %v1846_v0 }
  0x9f   : > { %1488 = vmatmul.mubr.f32.vlgmr.msra.gmra.mrb[0].mxu0 %v393_v11 }
  0xa0   : > { %1491 = vmatpush3.xpose.msra.mxu0 %v404_v10  ;;  %1492 = vmatprep.mubr.msk.f32.mxu0 %vm1847_vm0, %v1846_v0 }
  0xa1   : > { %1495 = vmatprep.subr.mxu0 %v1846_v0 }
  0xa7   : > { %1493 = vmatmul.mubr.f32.vlgmr.msra.gmra.mrb[0].mxu0 %v391_v8 }
  0xa8   : > { %1496 = vmatpush3.xpose.msra.mxu0 %v326_v5  ;;  %1497 = vmatprep.mubr.msk.f32.mxu0 %vm1847_vm0, %v1846_v0 }
  0xaf   : > { %1498 = vmatmul.mubr.f32.vlgmr.msra.gmra.mrb[0].mxu0 %v391_v8 }
 0x182   : > { %v767_v16 = vpop.f32.mrb[0].mxu0 }
 0x183   : > { %v1499_v17 = vpop.f32.mrb[1].mxu0  ;;  %v772_v18 = vsel %vm771_vm2, %v767_v16, -inf }
 0x184   : > { %773 = vmax.xlane.f32.xlu0 %v772_v18 }
 0x211   : > { %v774_v19 = vpop.xlane.xlu0 %773 }
 0x212   : > { %v775_v20 = vsub.f32 %v767_v16, %v774_v19 }
 0x214   : > { %v776_v21 = vmul.f32 1.442695, %v775_v20 }
 0x216   : > { %1629 = vpow2.f32 %v776_v21 }
 0x220   : > { %v1630_v22 = vpop.eup %1629 }
 0x221   : > { %v778_v23 = vsel %vm771_vm2, %v1630_v22, 0.0 }
 0x222   : > { %779 = vadd.xlane.f32.xlu0 %v778_v23 }
 0x2af   : > { %v780_v26 = vpop.xlane.xlu0 %779 }
 0x2b0   : > { %1631 = vrcp.f32 %v780_v26 }
 0x2ba   : > { %v1632_v28 = vpop.eup %1631 }
 0x2bb   : > { %v782_v29 = vmul.f32 %v1632_v28, %v1630_v22 }
 0x2bd   : > { %v785_v30 = vsel %vm771_vm2, %v782_v29, 0  ;;  %783 = vst.msk [vmem:[%s313_s27] sm:$0xff] %vm771_vm2, %v782_v29 }
 0x2be   : > { %v853_v32 = vand.u32 4294901760, %v785_v30 }
 0x2c0   : > { %v854_v33 = vsub.f32 %v785_v30, %v853_v32 }
 0x2c2   : > { %v855_v35 = vand.u32 4294901760, %v854_v33 }
 0x2c4   : > { %v856_v36 = vsub.f32 %v854_v33, %v855_v35 }
 0x2c6   : > { %v857_v38 = vand.u32 4294901760, %v856_v36 }
 0x2c8   : > { %1503 = vmatmul.mubr.f32.vlgmr.msra.gmra.mrb[0].mxu1 %v857_v38 }
 0x2c9   : > { %1506 = vmatpush3.msra.mxu1 %v868_v37  ;;  %1507 = vmatprep.mubr.msk.f32.mxu1 %vm1847_vm0, %v1846_v0 }
 0x2ca   : > { %1510 = vmatprep.subr.mxu1 %v1846_v0 }
 0x2d0   : > { %1508 = vmatmul.mubr.f32.vlgmr.msra.gmra.mrb[0].mxu1 %v853_v32 }
 0x2d1   : > { %1511 = vmatpush3.msra.mxu1 %v865_v27  ;;  %1512 = vmatprep.mubr.msk.f32.mxu1 %vm1847_vm0, %v1846_v0 }
 0x2d2   : > { %1515 = vmatprep.subr.mxu1 %v1846_v0 }
 0x2d8   : > { %1513 = vmatmul.mubr.f32.vlgmr.msra.gmra.mrb[0].mxu1 %v854_v33 }
 0x2d9   : > { %1516 = vmatpush3.msra.mxu1 %v788_v25  ;;  %1517 = vmatprep.mubr.msk.f32.mxu1 %vm1847_vm0, %v1846_v0 }
 0x2da   : > { %1520 = vmatprep.subr.mxu1 %v1846_v0 }
 0x2e0   : > { %1518 = vmatmul.mubr.f32.vlgmr.msra.gmra.mrb[0].mxu1 %v855_v35 }
 0x2e1   : > { %1521 = vmatpush3.msra.mxu1 %v866_v31  ;;  %1522 = vmatprep.mubr.msk.f32.mxu1 %vm1847_vm0, %v1846_v0 }
 0x2e2   : > { %1525 = vmatprep.subr.mxu1 %v1846_v0 }
 0x2e8   : > { %1523 = vmatmul.mubr.f32.vlgmr.msra.gmra.mrb[0].mxu1 %v853_v32 }
 0x2e9   : > { %1526 = vmatpush3.msra.mxu1 %v788_v25  ;;  %1527 = vmatprep.mubr.msk.f32.mxu1 %vm1847_vm0, %v1846_v0 }
 0x2f0   : > { %1528 = vmatmul.mubr.f32.vlgmr.msra.gmra.mrb[0].mxu1 %v853_v32 }
 0x2f1   : > { %1736 = shalt.err (!%p1733_p13)
}
 0x2f2   : > { %s1737_s9 = scalar_lea.hbm %s2136_s11, 128  ;;  %s1741_s19 = scalar_lea.hbm %s2218_s4, 256 }
 0x2f3   : > { %p1738_p11 = scmp.ne.s32.totalorder %s2136_s11, %s1737_s9  ;;  %p1742_p7 = scmp.lt.u32.totalorder %s2136_s11, %s2218_s4 }
 0x2f4   : > { %p1743_p3 = scmp.lt.u32.totalorder %s1741_s19, %s1737_s9  ;;  %p1745_p4 = scmp.lt.u32.totalorder %s1737_s9, %s2136_s11 }
 0x2f5   : > { %p1739_p2 = pnand %p1738_p11, %p2246_p10 }
 0x2f6   : > { %p1744_p0 = por %p1743_p3, %p1742_p7 }
 0x2f7   : > { %p1740_p5 = pneg %p1739_p2 }
 0x2f8   : > { %p1746_p12 = por %p1745_p4, %p1744_p0 }
 0x2fa   : > { %p1747_p1 = pnand %p1746_p12, %p1740_p5 }
 0x2fc   : > { %1750 = shalt.err (!%p1747_p1)
}
 0x2fd   : > { %1557 = dma.vmem_to_hbm [thread:$0]  (%p2246_p10), %s1269_s13, 128, %s2136_s11, %s1240_s26  }
 0x2fe   : > { %s306_s24 = scalar_lea.vmem [#allocation8], %s2070_s12  ;;  %s2164_s14 = scalar_lea.hbm %s2217_s3, %s1442_s5 }
 0x2ff   : > { %s1254_s21 = sshll.u32 %s306_s24, 4  ;;  %s1235_s1 = scalar_lea.sflag [#allocation4], %s2067_s25  ;;  %s2166_s21 = int_to_ptr.vmem [resolvable:$true] %s1254_s21 }
 0x300   : > { %s1751_s7 = scalar_lea.vmem %s2166_s21, 128  ;;  %s1849_s18 = smov [#allocation8]  }
 0x301   : > { %p1752_p8 = scmp.ne.s32.totalorder %s2166_s21, %s1751_s7  ;;  %s1755_s12 = sshll.u32 %s1849_s18, 4  ;;  %s1756_s12 = int_to_ptr.vmem [resolvable:$false] %s1755_s12 }
 0x302   : > { %s1757_s5 = scalar_lea.vmem %s1756_s12, 256  ;;  %p1758_p13 = scmp.lt.s32.totalorder %s2166_s21, %s1756_s12 }
 0x303   : > { %p1753_p9 = pnand %p1752_p8, %p2246_p10  ;;  %p1759_p11 = scmp.lt.s32.totalorder %s1757_s5, %s1751_s7 }
 0x305   : > { %p1754_p6 = pneg %p1753_p9  ;;  %p1760_p2 = por %p1759_p11, %p1758_p13 }
 0x307   : > { %p1761_p5 = pnand %p1760_p2, %p1754_p6 }
 0x3c3   : > { %v1229_v39 = vpop.f32.mrb[0].mxu1 }
 0x3c4   : > { %1233 = vst.msk [vmem:[%s306_s24] sm:$0xff] %vm318_vm1, %v1229_v39  ;;  %v1529_v40 = vpop.f32.mrb[1].mxu1 }
 0x3c5   : > { %1764 = shalt.err (!%p1761_p5)
}
 0x3c6   : > { %s1765_s25 = scalar_lea.hbm %s2164_s14, 128  ;;  %s1769_s26 = scalar_lea.hbm %s2217_s3, 256 }
 0x3c7   : > { %p1766_p7 = scmp.ne.s32.totalorder %s2164_s14, %s1765_s25  ;;  %p1770_p4 = scmp.lt.u32.totalorder %s2164_s14, %s2217_s3 }
 0x3c8   : > { %p1771_p12 = scmp.lt.u32.totalorder %s1769_s26, %s1765_s25  ;;  %p1773_p8 = scmp.lt.u32.totalorder %s1765_s25, %s2164_s14 }
 0x3c9   : > { %p1767_p3 = pnand %p1766_p7, %p2246_p10 }
 0x3ca   : > { %p1772_p1 = por %p1771_p12, %p1770_p4 }
 0x3cb   : > { %p1768_p0 = pneg %p1767_p3 }
 0x3cc   : > { %p1774_p9 = por %p1773_p8, %p1772_p1 }
 0x3ce   : > { %p1775_p6 = pnand %p1774_p9, %p1768_p0 }
 0x3d0   : > { %1778 = shalt.err (!%p1775_p6)
}
 0x3d1   : > { %1556 = dma.vmem_to_hbm [thread:$0]  (%p2246_p10), %s2166_s21, 128, %s2164_s14, %s1235_s1  }
 0x3d2 PF: > { %s2247_s9 = sld [smem:[#allocation16_spill]]  ;;  %s1280_s10 = sand.u32 1, %s1821_s15  }
 0x3d3   : > { %p2248_p13 = scmp.ne.s32.totalorder %s2235_s30, 0  ;;  %s1281_s20 = scalar_lea.sflag [#allocation4], %s1280_s10 }
 0x3d8   : > { %p2249_p11 = scmp.ge.s32.totalorder %s2247_s9, 2 }
 0x3da   : > { %p1571_p2 = pnand %p2249_p11, %p2248_p13 }
 0x3dc   : > { %1812 = dma.done.wait (!%p1571_p2), %s1281_s20, 128  }
 0x3dd   : > { %1814 = vsyncadd (!%p1571_p2), %s1281_s20, 4294967168  ;;  %s1290_s19 = scalar_lea.sflag [#allocation10], %s1280_s10 }
 0x3de   : > { %1816 = dma.done.wait (!%p1571_p2), %s1290_s19, 128  }
 0x3df   : > { %1818 = vsyncadd (!%p1571_p2), %s1290_s19, 4294967168  ;;  %s27_s20 = sadd.s32 1, %s2247_s9   ;;  %s2250_s28 = sld [smem:[#allocation18_spill]] }
 0x3e0   : > { %p24_p5 = scmp.ge.s32.totalorder %s27_s20, 4   ;;  %s2251_s18 = sld [smem:[#allocation15_spill]] }
 0x3e1   : > { %s2252_s19 = sld [smem:[#allocation17_spill]]  ;;  %s2253_s15 = smov %s1825_s16 }
 0x3e2   : > { %s2254_s16 = smov %s1829_s17  ;;  %26 = sbr.rel (!%p24_p5) target bundleno = 12 (0xc), region = 118 }
 0x3e5   : > { %s2255_s17 = smov %s2250_s28 }
 0x3e9   :  { %1295 = vsyncpa [#allocation3], 1 }
 0x3ea   :  { %1297 = vsyncpa [#allocation3 + $0x1], 1 }
 0x3eb   :  { %1298 = vsyncpa [#allocation6], 1 }
 0x3ec   :  { %1300 = vsyncpa [#allocation6 + $0x1], 1 }
 0x3ed   :  { %1301 = vsyncpa [#allocation4], 1 }
 0x3ee   :  { %1303 = vsyncpa [#allocation4 + $0x1], 1 }
 0x3ef   :  { %1304 = vsyncpa [#allocation10], 1 }
 0x3f0   :  { %1306 = vsyncpa [#allocation10 + $0x1], 1 }

</bundles_post_ra>
